<compile_context>
chip_gen: v6e
topology: v6e:2x2x1
jax: 0.10.0
libtpu: 0.0.40
codegen_flags: <defaults>
</compile_context>

<pallas_src>
import jax
import jax.numpy as jnp
from jax import lax
from jax.experimental import pallas as pl
from jax.experimental.pallas import tpu as pltpu


# contraction: lhs dim 1 with rhs dim 1  ==  x @ W^T  (torch Linear weight is (out, in))
_DN = (((1,), (1,)), ((), ()))


def _gcn_self_kernel(u_ref, p_ref, n_ref, w1_ref, b1_ref, w2_ref, b2_ref,
                     emb_ref, score_ref):
    tb, H = u_ref.shape

    # Averaging in f32 (v5e has no bf16 VALU); fold the GCN propagation for
    # the user/pos pair before the linear:  (0.5*(x_u + x_p)) @ W^T.
    u32 = u_ref[...].astype(jnp.float32)
    p32 = p_ref[...].astype(jnp.float32)
    n32 = n_ref[...].astype(jnp.float32)

    # Stack the averaged u/p rows with the neg rows -> ONE matmul per layer.
    lhs = jnp.concatenate([0.5 * (u32 + p32), n32], axis=0).astype(jnp.bfloat16)

    w1 = w1_ref[...]                                      # (H, H) bf16
    b1 = b1_ref[...]                                      # (1, H) f32
    h = jnp.maximum(
        lax.dot_general(lhs, w1, _DN, preferred_element_type=jnp.float32) + b1,
        0.0)                                              # (2*tb, H) f32

    w2 = w2_ref[...]
    b2 = b2_ref[...]
    y2 = lax.dot_general(h.astype(jnp.bfloat16), w2, _DN,
                         preferred_element_type=jnp.float32) + b2

    y = y2[:tb]                                           # == y_u == y_p
    y_n = y2[tb:]

    # Packed slab: [y | y_n]  (u_out is aliased to the first H cols outside).
    emb_ref[:, :H] = y
    emb_ref[:, H:] = y_n

    # Scores: pos = <y_u, y_p> = <y, y>,  neg = <y_u, y_n>.
    score_ref[:, 0:1] = jnp.sum(y * y, axis=1, keepdims=True)
    score_ref[:, 1:2] = jnp.sum(y * y_n, axis=1, keepdims=True)


def _round_up(x, m):
    return ((x + m - 1) // m) * m


def _choose_tile_and_vmem(B, H):
    """Generation-aware batch tile + scoped-VMEM limit."""
    try:
        vmem_cap = int(pltpu.get_tpu_info().vmem_capacity_bytes)
    except Exception:
        vmem_cap = 64 << 20                      # assume the tightest (v7x-like) budget
    if vmem_cap <= 0:
        vmem_cap = 64 << 20

    # ~45% of physical VMEM: ~57 MiB on v5e/v6e (128 MiB), ~28 MiB on v7x (64 MiB).
    vmem_limit = max(16 << 20, min(int(0.45 * vmem_cap), 96 << 20))

    # resident weights/biases (bf16 W, f32 b); worst case double-buffered
    resident = 2 * (2 * 2 * H * H + 2 * 4 * H)
    headroom = 4 << 20                           # compiler internal scratch etc.
    avail = max(vmem_limit - resident - headroom, 1 << 20)

    # per-row cost: double-buffered streamed blocks (bf16 in, f32 out) plus
    # in-kernel temporaries (stacked LHS / h / y2)
    row_bytes = 3 * H * 2 + (2 * H + 2) * 4
    row_cost = 2 * row_bytes + 32 * H

    tb_cap = 2048 if vmem_cap >= (96 << 20) else 1024   # v5e/v6e vs v7x
    tb = max(16, min(tb_cap, avail // row_cost))
    tb = (tb // 16) * 16                          # bf16 sublane-tile friendly

    # Guarantee >= 2 grid steps when the batch allows it so the "parallel"
    # grid axis can shard across both v7x TensorCores.
    if B >= 32:
        tb = min(tb, _round_up(pl.cdiv(B, 2), 16))
    else:
        tb = min(tb, _round_up(max(B, 1), 16))
    tb = max(16, tb)
    return tb, int(vmem_limit)


def gcn_self_forward(user_emb_tbl, item_emb_tbl, w1, b1, w2, b2,
                     user, pos_item, neg_item):
    """Embedding gathers (plain JAX, bf16) + batch-tiled Pallas kernel."""
    H = user_emb_tbl.shape[1]

    # Gather straight to bf16: halves the HBM round trip the XLA gather
    # materializes and feeds the bf16 MXU path directly.
    u_e = jnp.take(user_emb_tbl, user, axis=0).astype(jnp.bfloat16)
    p_e = jnp.take(item_emb_tbl, pos_item, axis=0).astype(jnp.bfloat16)
    n_e = jnp.take(item_emb_tbl, neg_item, axis=0).astype(jnp.bfloat16)
    B = u_e.shape[0]

    tb, vmem_limit = _choose_tile_and_vmem(B, H)
    Bp = pl.cdiv(B, tb) * tb
    if Bp != B:
        pad = ((0, Bp - B), (0, 0))
        u_e = jnp.pad(u_e, pad)
        p_e = jnp.pad(p_e, pad)
        n_e = jnp.pad(n_e, pad)

    w1b = w1.astype(jnp.bfloat16)
    w2b = w2.astype(jnp.bfloat16)
    b1r = b1.reshape(1, H).astype(jnp.float32)
    b2r = b2.reshape(1, H).astype(jnp.float32)

    row = lambda i: (i, 0)
    const = lambda i: (0, 0)

    out_specs = (
        pl.BlockSpec((tb, 2 * H), row),    # packed [y (=y_p=y_u) | y_n]
        pl.BlockSpec((tb, 2), row),        # [pos_score, neg_score]
    )
    out_shape = (
        jax.ShapeDtypeStruct((Bp, 2 * H), jnp.float32),
        jax.ShapeDtypeStruct((Bp, 2), jnp.float32),
    )

    def run(single_buffer_consts):
        if single_buffer_consts:
            cspec = lambda shape: pl.BlockSpec(shape, const,
                                               pipeline_mode=pl.Buffered(1))
        else:
            cspec = lambda shape: pl.BlockSpec(shape, const)
        in_specs = [
            pl.BlockSpec((tb, H), row),    # u_e (bf16)
            pl.BlockSpec((tb, H), row),    # p_e (bf16)
            pl.BlockSpec((tb, H), row),    # n_e (bf16)
            cspec((H, H)),                 # w1 (bf16, VMEM-resident)
            cspec((1, H)),                 # b1 (f32)
            cspec((H, H)),                 # w2 (bf16, VMEM-resident)
            cspec((1, H)),                 # b2 (f32)
        ]
        return pl.pallas_call(
            _gcn_self_kernel,
            out_shape=out_shape,
            grid=(Bp // tb,),
            in_specs=in_specs,
            out_specs=out_specs,
            compiler_params=pltpu.CompilerParams(
                dimension_semantics=("parallel",),
                vmem_limit_bytes=vmem_limit,
            ),
        )(u_e, p_e, n_e, w1b, b1r, w2b, b2r)

    try:
        emb_slab, scores = run(True)       # weights/biases single-buffered
    except Exception:
        emb_slab, scores = run(False)      # fallback: default double buffering

    pos_score = scores[:B, 0:1]
    neg_score = scores[:B, 1:2]
    cat_emb = emb_slab[:B, :]              # cat(pos_emb, neg_emb) == [y | y_n]
    u_out = emb_slab[:B, :H]               # y_u (== y_p)
    return pos_score, neg_score, cat_emb, u_out


def _reference(user_emb_tbl, item_emb_tbl, w1, b1, w2, b2,
               user, pos_item, neg_item):
    """Pure-JAX reference mirroring the kernel's bf16-operand numerics."""
    u = jnp.take(user_emb_tbl, user, axis=0).astype(jnp.bfloat16)
    p = jnp.take(item_emb_tbl, pos_item, axis=0).astype(jnp.bfloat16)
    n = jnp.take(item_emb_tbl, neg_item, axis=0).astype(jnp.bfloat16)
    w1b, w2b = w1.astype(jnp.bfloat16), w2.astype(jnp.bfloat16)
    b1r = b1.reshape(1, -1).astype(jnp.float32)
    b2r = b2.reshape(1, -1).astype(jnp.float32)

    s = (0.5 * (u.astype(jnp.float32) + p.astype(jnp.float32))).astype(jnp.bfloat16)

    def layer(x_bf16, w_bf16, b):
        return lax.dot_general(x_bf16, w_bf16, _DN,
                               preferred_element_type=jnp.float32) + b

    h_s = jnp.maximum(layer(s, w1b, b1r), 0.0)
    h_n = jnp.maximum(layer(n, w1b, b1r), 0.0)
    y = layer(h_s.astype(jnp.bfloat16), w2b, b2r)      # y_u == y_p
    y_n = layer(h_n.astype(jnp.bfloat16), w2b, b2r)
    pos = jnp.sum(y * y, axis=1, keepdims=True)
    neg = jnp.sum(y * y_n, axis=1, keepdims=True)
    return pos, neg, jnp.concatenate([y, y_n], axis=-1), y


if __name__ == "__main__":
    key = jax.random.PRNGKey(0)
    num_users, num_items, H, B = 16, 16, 32, 8

    k_ue, k_ie, k_w1, k_w2, k_u, k_p, k_n = jax.random.split(key, 7)

    # nn.Embedding default init: N(0, 1)
    user_emb_tbl = jax.random.normal(k_ue, (num_users, H), dtype=jnp.float32)
    item_emb_tbl = jax.random.normal(k_ie, (num_items, H), dtype=jnp.float32)

    # GCNConv lin: glorot-uniform weight (out, in), zero bias
    lim = (6.0 / (H + H)) ** 0.5
    w1 = jax.random.uniform(k_w1, (H, H), jnp.float32, -lim, lim)
    w2 = jax.random.uniform(k_w2, (H, H), jnp.float32, -lim, lim)
    b1 = jnp.zeros((H,), jnp.float32)
    b2 = jnp.zeros((H,), jnp.float32)

    user = jax.random.randint(k_u, (B,), 0, num_users)
    pos_item = jax.random.randint(k_p, (B,), 0, num_items)
    neg_item = jax.random.randint(k_n, (B,), 0, num_items)

    outs = gcn_self_forward(user_emb_tbl, item_emb_tbl, w1, b1, w2, b2,
                            user, pos_item, neg_item)
    outs = jax.block_until_ready(outs)

    refs = _reference(user_emb_tbl, item_emb_tbl, w1, b1, w2, b2,
                      user, pos_item, neg_item)
    for o, r in zip(outs, refs):
        assert o.shape == r.shape, (o.shape, r.shape)
        assert jnp.allclose(o, r, atol=2e-3, rtol=2e-3), \
            float(jnp.max(jnp.abs(o.astype(jnp.float32) - r.astype(jnp.float32))))

    print("KERNEL_OK")
</pallas_src>

<mosaic_0001>
module attributes {stable_mosaic.version = 11 : i64} {
  func.func @_gcn_self_kernel(%arg0: i32, %arg1: memref<16x32xbf16, #tpu.memory_space<vmem>>, %arg2: memref<16x32xbf16, #tpu.memory_space<vmem>>, %arg3: memref<16x32xbf16, #tpu.memory_space<vmem>>, %arg4: memref<32x32xbf16, #tpu.memory_space<vmem>>, %arg5: memref<1x32xf32, #tpu.memory_space<vmem>>, %arg6: memref<32x32xbf16, #tpu.memory_space<vmem>>, %arg7: memref<1x32xf32, #tpu.memory_space<vmem>>, %arg8: memref<16x64xf32, #tpu.memory_space<vmem>>, %arg9: memref<16x2xf32, #tpu.memory_space<vmem>>) attributes {dimension_semantics = [#tpu.dimension_semantics<parallel>], iteration_bounds = array<i64: 1>, scalar_prefetch = 0 : i64, scratch_operands = 0 : i64, tpu.core_type = #tpu.core_type<tc>, window_params = [{transform_indices = @transform_0, window_bounds = array<i64: 16, 32>}, {transform_indices = @transform_1, window_bounds = array<i64: 16, 32>}, {transform_indices = @transform_2, window_bounds = array<i64: 16, 32>}, {pipeline_mode = #tpu.pipeline_mode<synchronous>, transform_indices = @transform_3, window_bounds = array<i64: 32, 32>}, {pipeline_mode = #tpu.pipeline_mode<synchronous>, transform_indices = @transform_4, window_bounds = array<i64: 1, 32>}, {pipeline_mode = #tpu.pipeline_mode<synchronous>, transform_indices = @transform_5, window_bounds = array<i64: 32, 32>}, {pipeline_mode = #tpu.pipeline_mode<synchronous>, transform_indices = @transform_6, window_bounds = array<i64: 1, 32>}, {transform_indices = @transform_7, window_bounds = array<i64: 16, 64>}, {transform_indices = @transform_8, window_bounds = array<i64: 16, 2>}]} {
    %c0 = arith.constant 0 : index
    %c0_0 = arith.constant 0 : index
    %0 = vector.load %arg1[%c0, %c0_0] : memref<16x32xbf16, #tpu.memory_space<vmem>>, vector<16x32xbf16>
    %1 = arith.extf %0 : vector<16x32xbf16> to vector<16x32xf32>
    %c0_1 = arith.constant 0 : index
    %c0_2 = arith.constant 0 : index
    %2 = vector.load %arg2[%c0_1, %c0_2] : memref<16x32xbf16, #tpu.memory_space<vmem>>, vector<16x32xbf16>
    %3 = arith.extf %2 : vector<16x32xbf16> to vector<16x32xf32>
    %c0_3 = arith.constant 0 : index
    %c0_4 = arith.constant 0 : index
    %4 = vector.load %arg3[%c0_3, %c0_4] : memref<16x32xbf16, #tpu.memory_space<vmem>>, vector<16x32xbf16>
    %5 = arith.extf %4 : vector<16x32xbf16> to vector<16x32xf32>
    %6 = arith.addf %1, %3 : vector<16x32xf32>
    %cst = arith.constant 5.000000e-01 : f32
    %7 = vector.broadcast %cst : f32 to vector<16x32xf32>
    %8 = arith.mulf %7, %6 : vector<16x32xf32>
    %9 = tpu.concatenate %8, %5 in 0 : vector<16x32xf32>, vector<16x32xf32> -> vector<32x32xf32>
    %10 = arith.truncf %9 : vector<32x32xf32> to vector<32x32xbf16>
    %c0_5 = arith.constant 0 : index
    %c0_6 = arith.constant 0 : index
    %11 = vector.load %arg4[%c0_5, %c0_6] : memref<32x32xbf16, #tpu.memory_space<vmem>>, vector<32x32xbf16>
    %c0_7 = arith.constant 0 : index
    %c0_8 = arith.constant 0 : index
    %12 = vector.load %arg5[%c0_7, %c0_8] : memref<1x32xf32, #tpu.memory_space<vmem>>, vector<1x32xf32>
    %cst_9 = arith.constant dense<0.000000e+00> : vector<32x32xf32>
    %13 = tpu.matmul %10, %11, %cst_9 {dimension_numbers = #tpu.dot_dimension_numbers<[1], [1], [0], [0], [0, 0, 1, 0], [], []>} : vector<32x32xbf16>, vector<32x32xbf16>, vector<32x32xf32> -> vector<32x32xf32>
    %14 = vector.broadcast %12 : vector<1x32xf32> to vector<32x32xf32>
    %15 = arith.addf %13, %14 : vector<32x32xf32>
    %cst_10 = arith.constant 0.000000e+00 : f32
    %16 = vector.broadcast %cst_10 : f32 to vector<32x32xf32>
    %17 = arith.maximumf %15, %16 : vector<32x32xf32>
    %c0_11 = arith.constant 0 : index
    %c0_12 = arith.constant 0 : index
    %18 = vector.load %arg6[%c0_11, %c0_12] : memref<32x32xbf16, #tpu.memory_space<vmem>>, vector<32x32xbf16>
    %c0_13 = arith.constant 0 : index
    %c0_14 = arith.constant 0 : index
    %19 = vector.load %arg7[%c0_13, %c0_14] : memref<1x32xf32, #tpu.memory_space<vmem>>, vector<1x32xf32>
    %20 = arith.truncf %17 : vector<32x32xf32> to vector<32x32xbf16>
    %cst_15 = arith.constant dense<0.000000e+00> : vector<32x32xf32>
    %21 = tpu.matmul %20, %18, %cst_15 {dimension_numbers = #tpu.dot_dimension_numbers<[1], [1], [0], [0], [0, 0, 1, 0], [], []>} : vector<32x32xbf16>, vector<32x32xbf16>, vector<32x32xf32> -> vector<32x32xf32>
    %22 = vector.broadcast %19 : vector<1x32xf32> to vector<32x32xf32>
    %23 = arith.addf %21, %22 : vector<32x32xf32>
    %24 = vector.extract_strided_slice %23 {offsets = [0, 0], sizes = [16, 32], strides = [1, 1]} : vector<32x32xf32> to vector<16x32xf32>
    %25 = vector.extract_strided_slice %23 {offsets = [16, 0], sizes = [16, 32], strides = [1, 1]} : vector<32x32xf32> to vector<16x32xf32>
    %c0_16 = arith.constant 0 : index
    %c0_17 = arith.constant 0 : index
    %26 = vector.load %arg8[%c0_16, %c0_17] : memref<16x64xf32, #tpu.memory_space<vmem>>, vector<16x32xf32>
    tpu.vector_store %arg8[%c0_16, %c0_17], %24 {strides = array<i32>} : memref<16x64xf32, #tpu.memory_space<vmem>>, vector<16x32xf32>,
    %c0_18 = arith.constant 0 : index
    %c32 = arith.constant 32 : index
    %27 = vector.load %arg8[%c0_18, %c32] : memref<16x64xf32, #tpu.memory_space<vmem>>, vector<16x32xf32>
    tpu.vector_store %arg8[%c0_18, %c32], %25 {strides = array<i32>} : memref<16x64xf32, #tpu.memory_space<vmem>>, vector<16x32xf32>,
    %28 = arith.mulf %24, %24 : vector<16x32xf32>
    %cst_19 = arith.constant dense<0.000000e+00> : vector<16xf32>
    %29 = vector.multi_reduction <add>, %28, %cst_19 [1] : vector<16x32xf32> to vector<16xf32>
    %30 = vector.shape_cast %29 : vector<16xf32> to vector<16x1xf32>
    %c0_20 = arith.constant 0 : index
    %c0_21 = arith.constant 0 : index
    %31 = vector.load %arg9[%c0_20, %c0_21] : memref<16x2xf32, #tpu.memory_space<vmem>>, vector<16x1xf32>
    tpu.vector_store %arg9[%c0_20, %c0_21], %30 {strides = array<i32>} : memref<16x2xf32, #tpu.memory_space<vmem>>, vector<16x1xf32>,
    %32 = arith.mulf %24, %25 : vector<16x32xf32>
    %cst_22 = arith.constant dense<0.000000e+00> : vector<16xf32>
    %33 = vector.multi_reduction <add>, %32, %cst_22 [1] : vector<16x32xf32> to vector<16xf32>
    %34 = vector.shape_cast %33 : vector<16xf32> to vector<16x1xf32>
    %c0_23 = arith.constant 0 : index
    %c1 = arith.constant 1 : index
    %35 = vector.load %arg9[%c0_23, %c1] : memref<16x2xf32, #tpu.memory_space<vmem>>, vector<16x1xf32>
    tpu.vector_store %arg9[%c0_23, %c1], %34 {strides = array<i32>} : memref<16x2xf32, #tpu.memory_space<vmem>>, vector<16x1xf32>,
    return
  }
  func.func @transform_0(%arg0: i32) -> (i32, i32) {
    %c0_i32 = arith.constant 0 : i32
    %c0_i32_0 = arith.constant 0 : i32
    return %arg0, %c0_i32 : i32, i32
  }
  func.func @transform_1(%arg0: i32) -> (i32, i32) {
    %c0_i32 = arith.constant 0 : i32
    %c0_i32_0 = arith.constant 0 : i32
    return %arg0, %c0_i32 : i32, i32
  }
  func.func @transform_2(%arg0: i32) -> (i32, i32) {
    %c0_i32 = arith.constant 0 : i32
    %c0_i32_0 = arith.constant 0 : i32
    return %arg0, %c0_i32 : i32, i32
  }
  func.func @transform_3(%arg0: i32) -> (i32, i32) {
    %c0_i32 = arith.constant 0 : i32
    %c0_i32_0 = arith.constant 0 : i32
    %c0_i32_1 = arith.constant 0 : i32
    return %c0_i32, %c0_i32_0 : i32, i32
  }
  func.func @transform_4(%arg0: i32) -> (i32, i32) {
    %c0_i32 = arith.constant 0 : i32
    %c0_i32_0 = arith.constant 0 : i32
    %c0_i32_1 = arith.constant 0 : i32
    return %c0_i32, %c0_i32_0 : i32, i32
  }
  func.func @transform_5(%arg0: i32) -> (i32, i32) {
    %c0_i32 = arith.constant 0 : i32
    %c0_i32_0 = arith.constant 0 : i32
    %c0_i32_1 = arith.constant 0 : i32
    return %c0_i32, %c0_i32_0 : i32, i32
  }
  func.func @transform_6(%arg0: i32) -> (i32, i32) {
    %c0_i32 = arith.constant 0 : i32
    %c0_i32_0 = arith.constant 0 : i32
    %c0_i32_1 = arith.constant 0 : i32
    return %c0_i32, %c0_i32_0 : i32, i32
  }
  func.func @transform_7(%arg0: i32) -> (i32, i32) {
    %c0_i32 = arith.constant 0 : i32
    %c0_i32_0 = arith.constant 0 : i32
    return %arg0, %c0_i32 : i32, i32
  }
  func.func @transform_8(%arg0: i32) -> (i32, i32) {
    %c0_i32 = arith.constant 0 : i32
    %c0_i32_0 = arith.constant 0 : i32
    return %arg0, %c0_i32 : i32, i32
  }
}

module attributes {stable_mosaic.version = 11 : i64} {
  func.func @_gcn_self_kernel(%arg0: i32, %arg1: memref<16x32xbf16, #tpu.memory_space<vmem>>, %arg2: memref<16x32xbf16, #tpu.memory_space<vmem>>, %arg3: memref<16x32xbf16, #tpu.memory_space<vmem>>, %arg4: memref<32x32xbf16, #tpu.memory_space<vmem>>, %arg5: memref<1x32xf32, #tpu.memory_space<vmem>>, %arg6: memref<32x32xbf16, #tpu.memory_space<vmem>>, %arg7: memref<1x32xf32, #tpu.memory_space<vmem>>, %arg8: memref<16x64xf32, #tpu.memory_space<vmem>>, %arg9: memref<16x2xf32, #tpu.memory_space<vmem>>) attributes {dimension_semantics = [#tpu.dimension_semantics<parallel>], iteration_bounds = array<i64: 1>, scalar_prefetch = 0 : i64, scratch_operands = 0 : i64, tpu.core_type = #tpu.core_type<tc>, window_params = [{transform_indices = @transform_0, window_bounds = array<i64: 16, 32>}, {transform_indices = @transform_1, window_bounds = array<i64: 16, 32>}, {transform_indices = @transform_2, window_bounds = array<i64: 16, 32>}, {pipeline_mode = #tpu.pipeline_mode<synchronous>, transform_indices = @transform_3, window_bounds = array<i64: 32, 32>}, {pipeline_mode = #tpu.pipeline_mode<synchronous>, transform_indices = @transform_4, window_bounds = array<i64: 1, 32>}, {pipeline_mode = #tpu.pipeline_mode<synchronous>, transform_indices = @transform_5, window_bounds = array<i64: 32, 32>}, {pipeline_mode = #tpu.pipeline_mode<synchronous>, transform_indices = @transform_6, window_bounds = array<i64: 1, 32>}, {transform_indices = @transform_7, window_bounds = array<i64: 16, 64>}, {transform_indices = @transform_8, window_bounds = array<i64: 16, 2>}]} {
    %c0 = arith.constant 0 : index
    %c0_0 = arith.constant 0 : index
    %0 = vector.load %arg1[%c0, %c0_0] : memref<16x32xbf16, #tpu.memory_space<vmem>>, vector<16x32xbf16>
    %1 = arith.extf %0 : vector<16x32xbf16> to vector<16x32xf32>
    %c0_1 = arith.constant 0 : index
    %c0_2 = arith.constant 0 : index
    %2 = vector.load %arg2[%c0_1, %c0_2] : memref<16x32xbf16, #tpu.memory_space<vmem>>, vector<16x32xbf16>
    %3 = arith.extf %2 : vector<16x32xbf16> to vector<16x32xf32>
    %c0_3 = arith.constant 0 : index
    %c0_4 = arith.constant 0 : index
    %4 = vector.load %arg3[%c0_3, %c0_4] : memref<16x32xbf16, #tpu.memory_space<vmem>>, vector<16x32xbf16>
    %5 = arith.extf %4 : vector<16x32xbf16> to vector<16x32xf32>
    %6 = arith.addf %1, %3 : vector<16x32xf32>
    %cst = arith.constant 5.000000e-01 : f32
    %7 = vector.broadcast %cst : f32 to vector<16x32xf32>
    %8 = arith.mulf %7, %6 : vector<16x32xf32>
    %9 = tpu.concatenate %8, %5 in 0 : vector<16x32xf32>, vector<16x32xf32> -> vector<32x32xf32>
    %10 = arith.truncf %9 : vector<32x32xf32> to vector<32x32xbf16>
    %c0_5 = arith.constant 0 : index
    %c0_6 = arith.constant 0 : index
    %11 = vector.load %arg4[%c0_5, %c0_6] : memref<32x32xbf16, #tpu.memory_space<vmem>>, vector<32x32xbf16>
    %c0_7 = arith.constant 0 : index
    %c0_8 = arith.constant 0 : index
    %12 = vector.load %arg5[%c0_7, %c0_8] : memref<1x32xf32, #tpu.memory_space<vmem>>, vector<1x32xf32>
    %cst_9 = arith.constant dense<0.000000e+00> : vector<32x32xf32>
    %13 = tpu.matmul %10, %11, %cst_9 {dimension_numbers = #tpu.dot_dimension_numbers<[1], [1], [0], [0], [0, 0, 1, 0], [], []>} : vector<32x32xbf16>, vector<32x32xbf16>, vector<32x32xf32> -> vector<32x32xf32>
    %14 = vector.broadcast %12 : vector<1x32xf32> to vector<32x32xf32>
    %15 = arith.addf %13, %14 : vector<32x32xf32>
    %cst_10 = arith.constant 0.000000e+00 : f32
    %16 = vector.broadcast %cst_10 : f32 to vector<32x32xf32>
    %17 = arith.maximumf %15, %16 : vector<32x32xf32>
    %c0_11 = arith.constant 0 : index
    %c0_12 = arith.constant 0 : index
    %18 = vector.load %arg6[%c0_11, %c0_12] : memref<32x32xbf16, #tpu.memory_space<vmem>>, vector<32x32xbf16>
    %c0_13 = arith.constant 0 : index
    %c0_14 = arith.constant 0 : index
    %19 = vector.load %arg7[%c0_13, %c0_14] : memref<1x32xf32, #tpu.memory_space<vmem>>, vector<1x32xf32>
    %20 = arith.truncf %17 : vector<32x32xf32> to vector<32x32xbf16>
    %cst_15 = arith.constant dense<0.000000e+00> : vector<32x32xf32>
    %21 = tpu.matmul %20, %18, %cst_15 {dimension_numbers = #tpu.dot_dimension_numbers<[1], [1], [0], [0], [0, 0, 1, 0], [], []>} : vector<32x32xbf16>, vector<32x32xbf16>, vector<32x32xf32> -> vector<32x32xf32>
    %22 = vector.broadcast %19 : vector<1x32xf32> to vector<32x32xf32>
    %23 = arith.addf %21, %22 : vector<32x32xf32>
    %24 = vector.extract_strided_slice %23 {offsets = [0, 0], sizes = [16, 32], strides = [1, 1]} : vector<32x32xf32> to vector<16x32xf32>
    %25 = vector.extract_strided_slice %23 {offsets = [16, 0], sizes = [16, 32], strides = [1, 1]} : vector<32x32xf32> to vector<16x32xf32>
    %c0_16 = arith.constant 0 : index
    %c0_17 = arith.constant 0 : index
    %26 = vector.load %arg8[%c0_16, %c0_17] : memref<16x64xf32, #tpu.memory_space<vmem>>, vector<16x32xf32>
    tpu.vector_store %arg8[%c0_16, %c0_17], %24 {strides = array<i32>} : memref<16x64xf32, #tpu.memory_space<vmem>>, vector<16x32xf32>,
    %c0_18 = arith.constant 0 : index
    %c32 = arith.constant 32 : index
    %27 = vector.load %arg8[%c0_18, %c32] : memref<16x64xf32, #tpu.memory_space<vmem>>, vector<16x32xf32>
    tpu.vector_store %arg8[%c0_18, %c32], %25 {strides = array<i32>} : memref<16x64xf32, #tpu.memory_space<vmem>>, vector<16x32xf32>,
    %28 = arith.mulf %24, %24 : vector<16x32xf32>
    %cst_19 = arith.constant dense<0.000000e+00> : vector<16xf32>
    %29 = vector.multi_reduction <add>, %28, %cst_19 [1] : vector<16x32xf32> to vector<16xf32>
    %30 = vector.shape_cast %29 : vector<16xf32> to vector<16x1xf32>
    %c0_20 = arith.constant 0 : index
    %c0_21 = arith.constant 0 : index
    %31 = vector.load %arg9[%c0_20, %c0_21] : memref<16x2xf32, #tpu.memory_space<vmem>>, vector<16x1xf32>
    tpu.vector_store %arg9[%c0_20, %c0_21], %30 {strides = array<i32>} : memref<16x2xf32, #tpu.memory_space<vmem>>, vector<16x1xf32>,
    %32 = arith.mulf %24, %25 : vector<16x32xf32>
    %cst_22 = arith.constant dense<0.000000e+00> : vector<16xf32>
    %33 = vector.multi_reduction <add>, %32, %cst_22 [1] : vector<16x32xf32> to vector<16xf32>
    %34 = vector.shape_cast %33 : vector<16xf32> to vector<16x1xf32>
    %c0_23 = arith.constant 0 : index
    %c1 = arith.constant 1 : index
    %35 = vector.load %arg9[%c0_23, %c1] : memref<16x2xf32, #tpu.memory_space<vmem>>, vector<16x1xf32>
    tpu.vector_store %arg9[%c0_23, %c1], %34 {strides = array<i32>} : memref<16x2xf32, #tpu.memory_space<vmem>>, vector<16x1xf32>,
    return
  }
  func.func @transform_0(%arg0: i32) -> (i32, i32) {
    %c0_i32 = arith.constant 0 : i32
    %c0_i32_0 = arith.constant 0 : i32
    return %arg0, %c0_i32 : i32, i32
  }
  func.func @transform_1(%arg0: i32) -> (i32, i32) {
    %c0_i32 = arith.constant 0 : i32
    %c0_i32_0 = arith.constant 0 : i32
    return %arg0, %c0_i32 : i32, i32
  }
  func.func @transform_2(%arg0: i32) -> (i32, i32) {
    %c0_i32 = arith.constant 0 : i32
    %c0_i32_0 = arith.constant 0 : i32
    return %arg0, %c0_i32 : i32, i32
  }
  func.func @transform_3(%arg0: i32) -> (i32, i32) {
    %c0_i32 = arith.constant 0 : i32
    %c0_i32_0 = arith.constant 0 : i32
    %c0_i32_1 = arith.constant 0 : i32
    return %c0_i32, %c0_i32_0 : i32, i32
  }
  func.func @transform_4(%arg0: i32) -> (i32, i32) {
    %c0_i32 = arith.constant 0 : i32
    %c0_i32_0 = arith.constant 0 : i32
    %c0_i32_1 = arith.constant 0 : i32
    return %c0_i32, %c0_i32_0 : i32, i32
  }
  func.func @transform_5(%arg0: i32) -> (i32, i32) {
    %c0_i32 = arith.constant 0 : i32
    %c0_i32_0 = arith.constant 0 : i32
    %c0_i32_1 = arith.constant 0 : i32
    return %c0_i32, %c0_i32_0 : i32, i32
  }
  func.func @transform_6(%arg0: i32) -> (i32, i32) {
    %c0_i32 = arith.constant 0 : i32
    %c0_i32_0 = arith.constant 0 : i32
    %c0_i32_1 = arith.constant 0 : i32
    return %c0_i32, %c0_i32_0 : i32, i32
  }
  func.func @transform_7(%arg0: i32) -> (i32, i32) {
    %c0_i32 = arith.constant 0 : i32
    %c0_i32_0 = arith.constant 0 : i32
    return %arg0, %c0_i32 : i32, i32
  }
  func.func @transform_8(%arg0: i32) -> (i32, i32) {
    %c0_i32 = arith.constant 0 : i32
    %c0_i32_0 = arith.constant 0 : i32
    return %arg0, %c0_i32 : i32, i32
  }
}

</mosaic_0001>

<bundles_post_ra>
// kernel: tpu_custom_call.1
= control target key start
LH: loop header
LB: loop body
LE: loop exit
PB: predicated region body
PF: predicated region fallthrough
CT: control target
= control target key end

     0   :  { %14 = vsyncpa [#allocation3], 0  ;;  %s661_s0 = inlined_call_operand.hbm [shape: bf16[16,32], index: 0, kind: input, shape index: {}]   ;;  %s662_s1 = inlined_call_operand.hbm [shape: bf16[16,32], index: 1, kind: input, shape index: {}]   ;;  %s663_s2 = inlined_call_operand.hbm [shape: bf16[16,32], index: 2, kind: input, shape index: {}]   ;;  %s664_s3 = inlined_call_operand.hbm [shape: bf16[32,32], index: 3, kind: input, shape index: {}]   ;;  %s665_s4 = inlined_call_operand.vmem [shape: f32[1,32], index: 4, kind: input, shape index: {}]   ;;  %s666_s5 = inlined_call_operand.hbm [shape: bf16[32,32], index: 5, kind: input, shape index: {}]   ;;  %s667_s6 = inlined_call_operand.vmem [shape: f32[1,32], index: 6, kind: input, shape index: {}]   ;;  %s668_s7 = inlined_call_operand.hbm [shape: f32[16,64], index: 7, kind: output, shape index: {0}]   ;;  %s669_s8 = inlined_call_operand.vmem [shape: f32[16,2], index: 8, kind: output, shape index: {1}]  }
   0x1   :  { %15 = vsyncpa [#allocation6], 0 }
   0x2   :  { %16 = vsyncpa [#allocation9], 0 }
   0x3   :  { %17 = vsyncpa [#allocation4], 0  ;;  %s536_s27 = smov [#allocation5]   ;;  %s537_s29 = smov [#allocation8]  }
   0x4   :  { %s35_s28 = sshll.u32 %s536_s27, 4  ;;  %s59_s30 = sshll.u32 %s537_s29, 4  ;;  %s36_s28 = int_to_ptr.vmem [resolvable:$true] %s35_s28  ;;  %s60_s30 = int_to_ptr.vmem [resolvable:$true] %s59_s30 }
   0x5   :  { %s416_s9 = scalar_lea.vmem %s36_s28, 128  ;;  %p421_p1 = scmp.lt.s32.totalorder %s36_s28, %s36_s28 }
   0x6   :  { %p417_p0 = scmp.ne.s32.totalorder %s36_s28, %s416_s9  ;;  %p422_p2 = scmp.lt.s32.totalorder %s416_s9, %s416_s9 }
   0x8   :  { %p423_p3 = por %p422_p2, %p421_p1 }
   0xa   :  { %p424_p4 = pnand %p423_p3, %p417_p0 }
   0xc   :  { %427 = shalt.err (!%p424_p4)
}
   0xd   :  { %s538_s10 = smov 64   ;;  %s539_s11 = smov 4  }
   0xe   :  { %41 = dma.hbm_to_vmem [thread:$0]  %s662_s1, 128, %s36_s28, [#allocation6], %s538_s10, %s538_s10, %s539_s11  }
   0xf   :  { %s436_s14 = scalar_lea.vmem %s60_s30, 256  ;;  %p441_p6 = scmp.lt.s32.totalorder %s60_s30, %s60_s30 }
  0x10   :  { %p437_p5 = scmp.ne.s32.totalorder %s60_s30, %s436_s14  ;;  %p442_p7 = scmp.lt.s32.totalorder %s436_s14, %s436_s14 }
  0x12   :  { %p443_p8 = por %p442_p7, %p441_p6 }
  0x14   :  { %p444_p9 = pnand %p443_p8, %p437_p5 }
  0x16   :  { %447 = shalt.err (!%p444_p9)
}
  0x17   :  { %65 = dma.hbm_to_vmem [thread:$0]  %s664_s3, 256, %s60_s30, [#allocation9], %s538_s10, %s538_s10, %s539_s11  }
  0x18   :  { %s540_s17 = smov [#allocation2]   ;;  %s541_s19 = smov [#allocation7]  }
  0x19   :  { %s23_s18 = sshll.u32 %s540_s17, 4  ;;  %s47_s20 = sshll.u32 %s541_s19, 4  ;;  %s24_s18 = int_to_ptr.vmem [resolvable:$true] %s23_s18  ;;  %s48_s20 = int_to_ptr.vmem [resolvable:$true] %s47_s20 }
  0x1a   :  { %s456_s1 = scalar_lea.vmem %s24_s18, 128  ;;  %p461_p11 = scmp.lt.s32.totalorder %s24_s18, %s24_s18 }
  0x1b   :  { %p457_p10 = scmp.ne.s32.totalorder %s24_s18, %s456_s1  ;;  %p462_p12 = scmp.lt.s32.totalorder %s456_s1, %s456_s1 }
  0x1d   :  { %p463_p13 = por %p462_p12, %p461_p11 }
  0x1f   :  { %p464_p0 = pnand %p463_p13, %p457_p10 }
  0x21   :  { %467 = shalt.err (!%p464_p0)
}
  0x22   :  { %29 = dma.hbm_to_vmem [thread:$0]  %s661_s0, 128, %s24_s18, [#allocation3], %s538_s10, %s538_s10, %s539_s11  }
  0x23   :  { %s476_s3 = scalar_lea.vmem %s48_s20, 128  ;;  %p481_p2 = scmp.lt.s32.totalorder %s48_s20, %s48_s20 }
  0x24   :  { %p477_p1 = scmp.ne.s32.totalorder %s48_s20, %s476_s3  ;;  %p482_p3 = scmp.lt.s32.totalorder %s476_s3, %s476_s3 }
  0x26   :  { %p483_p4 = por %p482_p3, %p481_p2 }
  0x28   :  { %p484_p5 = pnand %p483_p4, %p477_p1 }
  0x2a   :  { %487 = shalt.err (!%p484_p5)
}
  0x2b   :  { %53 = dma.hbm_to_vmem [thread:$0]  %s663_s2, 128, %s48_s20, [#allocation6], %s538_s10, %s538_s10, %s539_s11  }
  0x2c   :  { %s542_s25 = smov [#allocation10]  }
  0x2d   :  { %s73_s26 = sshll.u32 %s542_s25, 4  ;;  %s74_s26 = int_to_ptr.vmem [resolvable:$true] %s73_s26 }
  0x2e   :  { %s496_s27 = scalar_lea.vmem %s74_s26, 256  ;;  %p501_p7 = scmp.lt.s32.totalorder %s74_s26, %s74_s26 }
  0x2f   :  { %p497_p6 = scmp.ne.s32.totalorder %s74_s26, %s496_s27  ;;  %p502_p8 = scmp.lt.s32.totalorder %s496_s27, %s496_s27 }
  0x31   :  { %p503_p9 = por %p502_p8, %p501_p7 }
  0x33   :  { %p504_p10 = pnand %p503_p9, %p497_p6 }
  0x35   :  { %507 = shalt.err (!%p504_p10)
}
  0x36   :  { %79 = dma.hbm_to_vmem [thread:$0]  %s666_s5, 256, %s74_s26, [#allocation9], %s538_s10, %s538_s10, %s539_s11  }
  0x37   :  { %528 = dma.done.wait [#allocation3], 128  }
  0x38   :  { %529 = vsyncadd [#allocation3], 4294967168 }
  0x39   :  { %530 = dma.done.wait [#allocation6], 256  }
  0x3a   :  { %531 = vsyncadd [#allocation6], 4294967040 }
  0x3b   :  { %532 = dma.done.wait [#allocation9], 512  }
  0x3c   :  { %533 = vsyncadd [#allocation9], 4294966784  ;;  %vm137_vm0 = vcmask 261120   ;;  %v403_v0 = vld [vmem:[#allocation8 + $0x8] sm:$0xff]   ;;  %v404_v1 = vld [vmem:[#allocation8] sm:$0xff]   ;;  %vm308_vm1 = vcmask 7168  }
  0x3d   :  { %388 = vmatprep.subr.msk.bf16.mxu0 %vm137_vm0, %v403_v0  ;;  %v148_v2 = vsel %vm137_vm0, %v403_v0, 0  ;;  %v357_v3 = vld [vmem:[#allocation2] sm:$0xff]   ;;  %v361_v4 = vld [vmem:[#allocation5] sm:$0xff]   ;;  %v406_v9 = vld [vmem:[#allocation10 + $0x8] sm:$0xff]   ;;  %v145_v14 = vsel %vm137_vm0, %v404_v1, 0  ;;  %vm319_vm2 = vcmask 15368  }
  0x3e   :  { %373 = vmatpush3.bf16.xpose.msra.mxu0 %v148_v2  ;;  %v358_v5 = vunpack.c.l.bf16 %v357_v3  ;;  %v359_v6 = vunpack.c.h.bf16 %v357_v3  ;;  %v362_v7 = vunpack.c.l.bf16 %v361_v4  ;;  %v363_v8 = vunpack.c.h.bf16 %v361_v4  ;;  %390 = vmatprep.subr.msk.bf16.mxu1 %vm137_vm0, %v406_v9  ;;  %v405_v17 = vld [vmem:[#allocation7] sm:$0xff]   ;;  %v407_v18 = vld [vmem:[#allocation10] sm:$0xff]   ;;  %v346_v22 = vld [vmem:[%s665_s4] ss:$0 sm:$0xff]  ;;  %s543_s4 = smov 32   ;;  %s544_s12 = smov [#allocation11]  }
  0x3f   :  { %389 = vmatprep.subr.msk.bf16.mxu0 %vm137_vm0, %v404_v1  ;;  %v236_v12 = vsel %vm137_vm0, %v406_v9, 0  ;;  %v233_v19 = vsel %vm137_vm0, %v407_v18, 0  ;;  %v351_v36 = vld [vmem:[%s667_s6] ss:$0 sm:$0xff]  ;;  %s327_s13 = sshll.u32 %s544_s12, 4  ;;  %vm297_vm3 = vcmask 523520   ;;  %s328_s13 = int_to_ptr.vmem [resolvable:$true] %s327_s13 }
  0x40   :  { %v110_v10 = vadd.f32 %v362_v7, %v358_v5  ;;  %v111_v11 = vadd.f32 %v363_v8, %v359_v6  ;;  %381 = vmatpush3.bf16.xpose.msra.mxu1 %v236_v12  ;;  %s508_s18 = scalar_lea.vmem %s328_s13, 256  ;;  %p513_p12 = scmp.lt.s32.totalorder %s328_s13, %s328_s13 }
  0x41   :  { %391 = vmatprep.subr.msk.bf16.mxu1 %vm137_vm0, %v407_v18  ;;  %p509_p11 = scmp.ne.s32.totalorder %s328_s13, %s508_s18  ;;  %p514_p13 = scmp.lt.s32.totalorder %s508_s18, %s508_s18 }
  0x42   :  { %v112_v13 = vmul.f32 0.5, %v110_v10  ;;  %v113_v15 = vmul.f32 0.5, %v111_v11 }
  0x43   :  { %p515_p0 = por %p514_p13, %p513_p12 }
  0x44   :  { %v114_v16 = vpack.c.bf16 %v113_v15, %v112_v13 }
  0x45   :  { %p516_p1 = pnand %p515_p0, %p509_p11 }
  0x46   :  { %375 = vmatpush3.bf16.xpose.msra.mxu0 %v145_v14  ;;  %376 = vmatprep.mubr.msk.bf16.mxu0 %vm137_vm0, %v114_v16 }
  0x48   :  { %383 = vmatpush3.bf16.xpose.msra.mxu1 %v233_v19 }
  0x4d   :  { %377 = vmatmul.mubr.msk.bf16.vlgmr.msra.gmra.mxu0 %vm137_vm0, %v405_v17 }
 0x10d   :  { %v378_v20 = vpop.f32.mrf.mxu0 }
 0x10e   :  { %v193_v26 = vadd.f32 %v378_v20, %v346_v22 }
 0x10f   :  { %v184_v21 = vpop.f32.mrf.mxu0 }
 0x110   :  { %v185_v24 = vadd.f32 %v346_v22, %v184_v21  ;;  %v201_v32 = vmax.f32 %v193_v26, 0.0 }
 0x111   :  { %v379_v23 = vpop.f32.mrf.mxu0 }
 0x112   :  { %v196_v25 = vadd.f32 %v379_v23, %v346_v22  ;;  %v199_v30 = vmax.f32 %v185_v24, 0.0 }
 0x113   :  { %v187_v27 = vpop.f32.mrf.mxu0 }
 0x114   :  { %v188_v28 = vadd.f32 %v346_v22, %v187_v27  ;;  %v202_v29 = vmax.f32 %v196_v25, 0.0 }
 0x116   :  { %v200_v31 = vmax.f32 %v188_v28, 0.0  ;;  %v209_v34 = vpack.c.bf16 %v202_v29, %v201_v32 }
 0x118   :  { %v208_v33 = vpack.c.bf16 %v200_v31, %v199_v30 }
 0x11a   :  { %384 = vmatprep.mubr.msk.bf16.mxu1 %vm137_vm0, %v208_v33 }
 0x11b   :  { %385 = vmatmul.mubr.msk.bf16.vlgmr.msra.gmra.mxu1 %vm137_vm0, %v209_v34 }
 0x1db   :  { %v386_v35 = vpop.f32.mrf.mxu1 }
 0x1dc   :  { %v281_v38 = vadd.f32 %v386_v35, %v351_v36 }
 0x1dd   :  { %v272_v37 = vpop.f32.mrf.mxu1 }
 0x1de   :  { %v273_v39 = vadd.f32 %v351_v36, %v272_v37 }
 0x1df   :  { %v387_v40 = vpop.f32.mrf.mxu1 }
 0x1e0   :  { %287 = vst.msk [vmem:[#allocation11] sm:$0xff] %vm137_vm0, %v273_v39  ;;  %v311_v41 = vmul.f32 %v281_v38, %v273_v39  ;;  %v300_v42 = vmul.f32 %v273_v39, %v273_v39  ;;  %v284_v44 = vadd.f32 %v387_v40, %v351_v36 }
 0x1e1   :  { %v275_v43 = vpop.f32.mrf.mxu1 }
 0x1e2   :  { %v276_v45 = vadd.f32 %v351_v36, %v275_v43  ;;  %v313_v46 = vsel %vm137_vm0, %v311_v41, 0.0  ;;  %v302_v47 = vsel %vm137_vm0, %v300_v42, 0.0 }
 0x1e3   :  { %314 = vadd.xlane.f32.xlu1 %v313_v46  ;;  %303 = vadd.xlane.f32.xlu0 %v302_v47 }
 0x1e4   :  { %288 = vst.msk [vmem:[#allocation11 + $0x8] sm:$0xff] %vm137_vm0, %v276_v45  ;;  %v312_v48 = vmul.f32 %v284_v44, %v276_v45  ;;  %v301_v49 = vmul.f32 %v276_v45, %v276_v45 }
 0x1e6   :  { %v316_v50 = vsel %vm137_vm0, %v312_v48, 0.0  ;;  %v305_v51 = vsel %vm137_vm0, %v301_v49, 0.0 }
 0x1e7   :  { %317 = vadd.xlane.f32.xlu1 %v316_v50  ;;  %306 = vadd.xlane.f32.xlu0 %v305_v51 }
 0x1f8   :  { %293 = vrot.lane.b32.xlu1 %v284_v44, %s543_s4 }
 0x1fd   :  { %291 = vrot.lane.b32.xlu0 %v281_v38, %s543_s4 }
 0x26c   :  { %v315_v52 = vpop.xlane.xlu1 %314  ;;  %v304_v53 = vpop.xlane.xlu0 %303 }
 0x26d   :  { %309 = vst.msk [vmem:[%s669_s8] sm:$0xff] %vm308_vm1, %v304_v53 }
 0x26e   :  { %320 = vst.msk [vmem:[%s669_s8] sm:$0xff] %vm319_vm2, %v315_v52 }
 0x270   :  { %v318_v54 = vpop.xlane.xlu1 %317  ;;  %v307_v55 = vpop.xlane.xlu0 %306 }
 0x271   :  { %310 = vst.msk [vmem:[%s669_s8 + $0x8] sm:$0xff] %vm308_vm1, %v307_v55 }
 0x272   :  { %321 = vst.msk [vmem:[%s669_s8 + $0x8] sm:$0xff] %vm319_vm2, %v318_v54 }
 0x274   :  { %v294_v56 = vpop.permute.xlu1 %293  ;;  %v292_v57 = vpop.permute.xlu0 %291 }
 0x275   :  { %299 = vst.msk [vmem:[#allocation11 + $0x8] sm:$0xff] %vm297_vm3, %v294_v56  ;;  %298 = vst.msk [vmem:[#allocation11] sm:$0xff] %vm297_vm3, %v292_v57 }
 0x276   :  { %519 = shalt.err (!%p516_p1)
}
 0x277   :  { %s545_s19 = smov 128   ;;  %s546_s20 = smov 8  }
 0x278   :  { %333 = dma.vmem_to_hbm [thread:$0]  %s328_s13, 256, %s668_s7, [#allocation4], %s545_s19, %s545_s19, %s546_s20  }
 0x279   :  { %534 = dma.done.wait [#allocation4], 256  }
 0x27a   :  { %535 = vsyncadd [#allocation4], 4294967040 }
 0x27b   :  { %341 = vsyncpa [#allocation3], 1 }
 0x27c   :  { %342 = vsyncpa [#allocation6], 1 }
 0x27d   :  { %343 = vsyncpa [#allocation9], 1 }
 0x27e   :  { %344 = vsyncpa [#allocation4], 1 }

// kernel: tpu_custom_call.1
= control target key start
LH: loop header
LB: loop body
LE: loop exit
PB: predicated region body
PF: predicated region fallthrough
CT: control target
= control target key end

     0   :  { %14 = vsyncpa [#allocation3], 0  ;;  %s661_s0 = inlined_call_operand.hbm [shape: bf16[16,32], index: 0, kind: input, shape index: {}]   ;;  %s662_s1 = inlined_call_operand.hbm [shape: bf16[16,32], index: 1, kind: input, shape index: {}]   ;;  %s663_s2 = inlined_call_operand.hbm [shape: bf16[16,32], index: 2, kind: input, shape index: {}]   ;;  %s664_s3 = inlined_call_operand.hbm [shape: bf16[32,32], index: 3, kind: input, shape index: {}]   ;;  %s665_s4 = inlined_call_operand.vmem [shape: f32[1,32], index: 4, kind: input, shape index: {}]   ;;  %s666_s5 = inlined_call_operand.hbm [shape: bf16[32,32], index: 5, kind: input, shape index: {}]   ;;  %s667_s6 = inlined_call_operand.vmem [shape: f32[1,32], index: 6, kind: input, shape index: {}]   ;;  %s668_s7 = inlined_call_operand.hbm [shape: f32[16,64], index: 7, kind: output, shape index: {0}]   ;;  %s669_s8 = inlined_call_operand.vmem [shape: f32[16,2], index: 8, kind: output, shape index: {1}]  }
   0x1   :  { %15 = vsyncpa [#allocation6], 0 }
   0x2   :  { %16 = vsyncpa [#allocation9], 0 }
   0x3   :  { %17 = vsyncpa [#allocation4], 0  ;;  %s536_s27 = smov [#allocation5]   ;;  %s537_s29 = smov [#allocation8]  }
   0x4   :  { %s35_s28 = sshll.u32 %s536_s27, 4  ;;  %s59_s30 = sshll.u32 %s537_s29, 4  ;;  %s36_s28 = int_to_ptr.vmem [resolvable:$true] %s35_s28  ;;  %s60_s30 = int_to_ptr.vmem [resolvable:$true] %s59_s30 }
   0x5   :  { %s416_s9 = scalar_lea.vmem %s36_s28, 128  ;;  %p421_p1 = scmp.lt.s32.totalorder %s36_s28, %s36_s28 }
   0x6   :  { %p417_p0 = scmp.ne.s32.totalorder %s36_s28, %s416_s9  ;;  %p422_p2 = scmp.lt.s32.totalorder %s416_s9, %s416_s9 }
   0x8   :  { %p423_p3 = por %p422_p2, %p421_p1 }
   0xa   :  { %p424_p4 = pnand %p423_p3, %p417_p0 }
   0xc   :  { %427 = shalt.err (!%p424_p4)
}
   0xd   :  { %s538_s10 = smov 64   ;;  %s539_s11 = smov 4  }
   0xe   :  { %41 = dma.hbm_to_vmem [thread:$0]  %s662_s1, 128, %s36_s28, [#allocation6], %s538_s10, %s538_s10, %s539_s11  }
   0xf   :  { %s436_s14 = scalar_lea.vmem %s60_s30, 256  ;;  %p441_p6 = scmp.lt.s32.totalorder %s60_s30, %s60_s30 }
  0x10   :  { %p437_p5 = scmp.ne.s32.totalorder %s60_s30, %s436_s14  ;;  %p442_p7 = scmp.lt.s32.totalorder %s436_s14, %s436_s14 }
  0x12   :  { %p443_p8 = por %p442_p7, %p441_p6 }
  0x14   :  { %p444_p9 = pnand %p443_p8, %p437_p5 }
  0x16   :  { %447 = shalt.err (!%p444_p9)
}
  0x17   :  { %65 = dma.hbm_to_vmem [thread:$0]  %s664_s3, 256, %s60_s30, [#allocation9], %s538_s10, %s538_s10, %s539_s11  }
  0x18   :  { %s540_s17 = smov [#allocation2]   ;;  %s541_s19 = smov [#allocation7]  }
  0x19   :  { %s23_s18 = sshll.u32 %s540_s17, 4  ;;  %s47_s20 = sshll.u32 %s541_s19, 4  ;;  %s24_s18 = int_to_ptr.vmem [resolvable:$true] %s23_s18  ;;  %s48_s20 = int_to_ptr.vmem [resolvable:$true] %s47_s20 }
  0x1a   :  { %s456_s1 = scalar_lea.vmem %s24_s18, 128  ;;  %p461_p11 = scmp.lt.s32.totalorder %s24_s18, %s24_s18 }
  0x1b   :  { %p457_p10 = scmp.ne.s32.totalorder %s24_s18, %s456_s1  ;;  %p462_p12 = scmp.lt.s32.totalorder %s456_s1, %s456_s1 }
  0x1d   :  { %p463_p13 = por %p462_p12, %p461_p11 }
  0x1f   :  { %p464_p0 = pnand %p463_p13, %p457_p10 }
  0x21   :  { %467 = shalt.err (!%p464_p0)
}
  0x22   :  { %29 = dma.hbm_to_vmem [thread:$0]  %s661_s0, 128, %s24_s18, [#allocation3], %s538_s10, %s538_s10, %s539_s11  }
  0x23   :  { %s476_s3 = scalar_lea.vmem %s48_s20, 128  ;;  %p481_p2 = scmp.lt.s32.totalorder %s48_s20, %s48_s20 }
  0x24   :  { %p477_p1 = scmp.ne.s32.totalorder %s48_s20, %s476_s3  ;;  %p482_p3 = scmp.lt.s32.totalorder %s476_s3, %s476_s3 }
  0x26   :  { %p483_p4 = por %p482_p3, %p481_p2 }
  0x28   :  { %p484_p5 = pnand %p483_p4, %p477_p1 }
  0x2a   :  { %487 = shalt.err (!%p484_p5)
}
  0x2b   :  { %53 = dma.hbm_to_vmem [thread:$0]  %s663_s2, 128, %s48_s20, [#allocation6], %s538_s10, %s538_s10, %s539_s11  }
  0x2c   :  { %s542_s25 = smov [#allocation10]  }
  0x2d   :  { %s73_s26 = sshll.u32 %s542_s25, 4  ;;  %s74_s26 = int_to_ptr.vmem [resolvable:$true] %s73_s26 }
  0x2e   :  { %s496_s27 = scalar_lea.vmem %s74_s26, 256  ;;  %p501_p7 = scmp.lt.s32.totalorder %s74_s26, %s74_s26 }
  0x2f   :  { %p497_p6 = scmp.ne.s32.totalorder %s74_s26, %s496_s27  ;;  %p502_p8 = scmp.lt.s32.totalorder %s496_s27, %s496_s27 }
  0x31   :  { %p503_p9 = por %p502_p8, %p501_p7 }
  0x33   :  { %p504_p10 = pnand %p503_p9, %p497_p6 }
  0x35   :  { %507 = shalt.err (!%p504_p10)
}
  0x36   :  { %79 = dma.hbm_to_vmem [thread:$0]  %s666_s5, 256, %s74_s26, [#allocation9], %s538_s10, %s538_s10, %s539_s11  }
  0x37   :  { %528 = dma.done.wait [#allocation3], 128  }
  0x38   :  { %529 = vsyncadd [#allocation3], 4294967168 }
  0x39   :  { %530 = dma.done.wait [#allocation6], 256  }
  0x3a   :  { %531 = vsyncadd [#allocation6], 4294967040 }
  0x3b   :  { %532 = dma.done.wait [#allocation9], 512  }
  0x3c   :  { %533 = vsyncadd [#allocation9], 4294966784  ;;  %vm137_vm0 = vcmask 261120   ;;  %v403_v0 = vld [vmem:[#allocation8 + $0x8] sm:$0xff]   ;;  %v404_v1 = vld [vmem:[#allocation8] sm:$0xff]   ;;  %vm308_vm1 = vcmask 7168  }
  0x3d   :  { %388 = vmatprep.subr.msk.bf16.mxu0 %vm137_vm0, %v403_v0  ;;  %v148_v2 = vsel %vm137_vm0, %v403_v0, 0  ;;  %v357_v3 = vld [vmem:[#allocation2] sm:$0xff]   ;;  %v361_v4 = vld [vmem:[#allocation5] sm:$0xff]   ;;  %v406_v9 = vld [vmem:[#allocation10 + $0x8] sm:$0xff]   ;;  %v145_v14 = vsel %vm137_vm0, %v404_v1, 0  ;;  %vm319_vm2 = vcmask 15368  }
  0x3e   :  { %373 = vmatpush3.bf16.xpose.msra.mxu0 %v148_v2  ;;  %v358_v5 = vunpack.c.l.bf16 %v357_v3  ;;  %v359_v6 = vunpack.c.h.bf16 %v357_v3  ;;  %v362_v7 = vunpack.c.l.bf16 %v361_v4  ;;  %v363_v8 = vunpack.c.h.bf16 %v361_v4  ;;  %390 = vmatprep.subr.msk.bf16.mxu1 %vm137_vm0, %v406_v9  ;;  %v405_v17 = vld [vmem:[#allocation7] sm:$0xff]   ;;  %v407_v18 = vld [vmem:[#allocation10] sm:$0xff]   ;;  %v346_v22 = vld [vmem:[%s665_s4] ss:$0 sm:$0xff]  ;;  %s543_s4 = smov 32   ;;  %s544_s12 = smov [#allocation11]  }
  0x3f   :  { %389 = vmatprep.subr.msk.bf16.mxu0 %vm137_vm0, %v404_v1  ;;  %v236_v12 = vsel %vm137_vm0, %v406_v9, 0  ;;  %v233_v19 = vsel %vm137_vm0, %v407_v18, 0  ;;  %v351_v36 = vld [vmem:[%s667_s6] ss:$0 sm:$0xff]  ;;  %s327_s13 = sshll.u32 %s544_s12, 4  ;;  %vm297_vm3 = vcmask 523520   ;;  %s328_s13 = int_to_ptr.vmem [resolvable:$true] %s327_s13 }
  0x40   :  { %v110_v10 = vadd.f32 %v362_v7, %v358_v5  ;;  %v111_v11 = vadd.f32 %v363_v8, %v359_v6  ;;  %381 = vmatpush3.bf16.xpose.msra.mxu1 %v236_v12  ;;  %s508_s18 = scalar_lea.vmem %s328_s13, 256  ;;  %p513_p12 = scmp.lt.s32.totalorder %s328_s13, %s328_s13 }
  0x41   :  { %391 = vmatprep.subr.msk.bf16.mxu1 %vm137_vm0, %v407_v18  ;;  %p509_p11 = scmp.ne.s32.totalorder %s328_s13, %s508_s18  ;;  %p514_p13 = scmp.lt.s32.totalorder %s508_s18, %s508_s18 }
  0x42   :  { %v112_v13 = vmul.f32 0.5, %v110_v10  ;;  %v113_v15 = vmul.f32 0.5, %v111_v11 }
  0x43   :  { %p515_p0 = por %p514_p13, %p513_p12 }
  0x44   :  { %v114_v16 = vpack.c.bf16 %v113_v15, %v112_v13 }
  0x45   :  { %p516_p1 = pnand %p515_p0, %p509_p11 }
  0x46   :  { %375 = vmatpush3.bf16.xpose.msra.mxu0 %v145_v14  ;;  %376 = vmatprep.mubr.msk.bf16.mxu0 %vm137_vm0, %v114_v16 }
  0x48   :  { %383 = vmatpush3.bf16.xpose.msra.mxu1 %v233_v19 }
  0x4d   :  { %377 = vmatmul.mubr.msk.bf16.vlgmr.msra.gmra.mxu0 %vm137_vm0, %v405_v17 }
 0x10d   :  { %v378_v20 = vpop.f32.mrf.mxu0 }
 0x10e   :  { %v193_v26 = vadd.f32 %v378_v20, %v346_v22 }
 0x10f   :  { %v184_v21 = vpop.f32.mrf.mxu0 }
 0x110   :  { %v185_v24 = vadd.f32 %v346_v22, %v184_v21  ;;  %v201_v32 = vmax.f32 %v193_v26, 0.0 }
 0x111   :  { %v379_v23 = vpop.f32.mrf.mxu0 }
 0x112   :  { %v196_v25 = vadd.f32 %v379_v23, %v346_v22  ;;  %v199_v30 = vmax.f32 %v185_v24, 0.0 }
 0x113   :  { %v187_v27 = vpop.f32.mrf.mxu0 }
 0x114   :  { %v188_v28 = vadd.f32 %v346_v22, %v187_v27  ;;  %v202_v29 = vmax.f32 %v196_v25, 0.0 }
 0x116   :  { %v200_v31 = vmax.f32 %v188_v28, 0.0  ;;  %v209_v34 = vpack.c.bf16 %v202_v29, %v201_v32 }
 0x118   :  { %v208_v33 = vpack.c.bf16 %v200_v31, %v199_v30 }
 0x11a   :  { %384 = vmatprep.mubr.msk.bf16.mxu1 %vm137_vm0, %v208_v33 }
 0x11b   :  { %385 = vmatmul.mubr.msk.bf16.vlgmr.msra.gmra.mxu1 %vm137_vm0, %v209_v34 }
 0x1db   :  { %v386_v35 = vpop.f32.mrf.mxu1 }
 0x1dc   :  { %v281_v38 = vadd.f32 %v386_v35, %v351_v36 }
 0x1dd   :  { %v272_v37 = vpop.f32.mrf.mxu1 }
 0x1de   :  { %v273_v39 = vadd.f32 %v351_v36, %v272_v37 }
 0x1df   :  { %v387_v40 = vpop.f32.mrf.mxu1 }
 0x1e0   :  { %287 = vst.msk [vmem:[#allocation11] sm:$0xff] %vm137_vm0, %v273_v39  ;;  %v311_v41 = vmul.f32 %v281_v38, %v273_v39  ;;  %v300_v42 = vmul.f32 %v273_v39, %v273_v39  ;;  %v284_v44 = vadd.f32 %v387_v40, %v351_v36 }
 0x1e1   :  { %v275_v43 = vpop.f32.mrf.mxu1 }
 0x1e2   :  { %v276_v45 = vadd.f32 %v351_v36, %v275_v43  ;;  %v313_v46 = vsel %vm137_vm0, %v311_v41, 0.0  ;;  %v302_v47 = vsel %vm137_vm0, %v300_v42, 0.0 }
 0x1e3   :  { %314 = vadd.xlane.f32.xlu1 %v313_v46  ;;  %303 = vadd.xlane.f32.xlu0 %v302_v47 }
 0x1e4   :  { %288 = vst.msk [vmem:[#allocation11 + $0x8] sm:$0xff] %vm137_vm0, %v276_v45  ;;  %v312_v48 = vmul.f32 %v284_v44, %v276_v45  ;;  %v301_v49 = vmul.f32 %v276_v45, %v276_v45 }
 0x1e6   :  { %v316_v50 = vsel %vm137_vm0, %v312_v48, 0.0  ;;  %v305_v51 = vsel %vm137_vm0, %v301_v49, 0.0 }
 0x1e7   :  { %317 = vadd.xlane.f32.xlu1 %v316_v50  ;;  %306 = vadd.xlane.f32.xlu0 %v305_v51 }
 0x1f8   :  { %293 = vrot.lane.b32.xlu1 %v284_v44, %s543_s4 }
 0x1fd   :  { %291 = vrot.lane.b32.xlu0 %v281_v38, %s543_s4 }
 0x26c   :  { %v315_v52 = vpop.xlane.xlu1 %314  ;;  %v304_v53 = vpop.xlane.xlu0 %303 }
 0x26d   :  { %309 = vst.msk [vmem:[%s669_s8] sm:$0xff] %vm308_vm1, %v304_v53 }
 0x26e   :  { %320 = vst.msk [vmem:[%s669_s8] sm:$0xff] %vm319_vm2, %v315_v52 }
 0x270   :  { %v318_v54 = vpop.xlane.xlu1 %317  ;;  %v307_v55 = vpop.xlane.xlu0 %306 }
 0x271   :  { %310 = vst.msk [vmem:[%s669_s8 + $0x8] sm:$0xff] %vm308_vm1, %v307_v55 }
 0x272   :  { %321 = vst.msk [vmem:[%s669_s8 + $0x8] sm:$0xff] %vm319_vm2, %v318_v54 }
 0x274   :  { %v294_v56 = vpop.permute.xlu1 %293  ;;  %v292_v57 = vpop.permute.xlu0 %291 }
 0x275   :  { %299 = vst.msk [vmem:[#allocation11 + $0x8] sm:$0xff] %vm297_vm3, %v294_v56  ;;  %298 = vst.msk [vmem:[#allocation11] sm:$0xff] %vm297_vm3, %v292_v57 }
 0x276   :  { %519 = shalt.err (!%p516_p1)
}
 0x277   :  { %s545_s19 = smov 128   ;;  %s546_s20 = smov 8  }
 0x278   :  { %333 = dma.vmem_to_hbm [thread:$0]  %s328_s13, 256, %s668_s7, [#allocation4], %s545_s19, %s545_s19, %s546_s20  }
 0x279   :  { %534 = dma.done.wait [#allocation4], 256  }
 0x27a   :  { %535 = vsyncadd [#allocation4], 4294967040 }
 0x27b   :  { %341 = vsyncpa [#allocation3], 1 }
 0x27c   :  { %342 = vsyncpa [#allocation6], 1 }
 0x27d   :  { %343 = vsyncpa [#allocation9], 1 }
 0x27e   :  { %344 = vsyncpa [#allocation4], 1 }

</bundles_post_ra>
